<compile_context>
chip_gen: v7x
topology: tpu7x:2x2x1
jax: 0.10.0
libtpu: 0.0.40
codegen_flags: <defaults>
</compile_context>

<pallas_src>
import numpy as np
import jax
import jax.numpy as jnp
from jax import lax
from jax.experimental import pallas as pl
from jax.experimental.pallas import tpu as pltpu


def _vmem_capacity_bytes():
    try:
        return int(pltpu.get_tpu_info().vmem_capacity_bytes)
    except Exception:
        return 64 * 1024 * 1024  # conservative (v7x)


def _pick_class_block(C, T, D, itemsize):
    """Classes per grid step.  Block ~ VMEM/8 so 2x(in+out) blocks ~ VMEM/2."""
    vmem_cap = _vmem_capacity_bytes()
    byte_budget = max(1 << 20, vmem_cap // 8)
    per_class = max(1, T * D * itemsize)
    cap = max(1, byte_budget // per_class)
    return int(min(cap, C))


def _make_kernel(mode, Cb, T, D, n_ctx, max_nl):
    half = n_ctx // 2

    # With max_nl == 0 the 'front'/'middle' layouts degenerate to 'end'.
    if mode == "end" or max_nl == 0:
        head = 1 + n_ctx
        tail = T - head

        def kernel(nl_ref, emb_ref, learn_ref, out_ref):
            del nl_ref  # no per-class data needed
            learn = learn_ref[...].astype(out_ref.dtype)       # (n_ctx, D)

            @pl.loop(0, Cb)
            def _(i):
                row0 = emb_ref[i, pl.ds(0, 1), :].astype(out_ref.dtype)
                out_ref[i, pl.ds(0, head), :] = jnp.concatenate([row0, learn], axis=0)
                if tail > 0:
                    out_ref[i, pl.ds(head, tail), :] = (
                        emb_ref[i, pl.ds(head, tail), :].astype(out_ref.dtype))

        return kernel

    name_start = 0 if mode == "front" else half
    Wt = 1 + n_ctx + max_nl          # only rows [0, Wt) are blended per class
    tail = T - Wt                    # rows [Wt, T) are identity -> verbatim copy

    def kernel(nl_ref, emb_ref, learn_ref, out_ref):
        learn = learn_ref[...].astype(out_ref.dtype)           # (n_ctx, D)
        t = lax.broadcasted_iota(jnp.int32, (Wt, 1), 0)        # prompt row index
        c0 = pl.program_id(0) * Cb

        @pl.loop(0, Cb)
        def _(i):
            nl = nl_ref[c0 + i]                                 # SMEM scalar
            # Identity rows of this class's head window.
            win = emb_ref[i, pl.ds(0, Wt), :].astype(out_ref.dtype)      # (Wt, D)
            # Class-name rows = first max_nl suffix rows (always in bounds).
            sfx = emb_ref[i, pl.ds(1 + n_ctx, max_nl), :].astype(out_ref.dtype)
            # Align class-name rows to their output position (static pad).
            name_val = jnp.pad(
                sfx, ((1 + name_start, Wt - 1 - name_start - max_nl), (0, 0)))

            if mode == "front":
                # [prefix | class-name(nl) | learnable(n_ctx) | rest-of-suffix]
                learn_idx = t - 1 - nl
                use_name = (t >= 1) & (t < 1 + nl)
            else:  # middle
                # [prefix | learn[:half] | class-name(nl) | learn[half:] | rest]
                learn_idx = jnp.where(t < 1 + half + nl, t - 1, t - 1 - nl)
                use_name = (t >= 1 + half) & (t < 1 + half + nl)

            # identity -> learnable selects (VPU, no MXU) -> class-name rows.
            val = win
            for k in range(n_ctx):          # n_ctx is tiny & static
                val = jnp.where(learn_idx == k, learn[k][None, :], val)
            val = jnp.where(use_name, name_val, val)

            out_ref[i, pl.ds(0, Wt), :] = val
            if tail > 0:
                out_ref[i, pl.ds(Wt, tail), :] = (
                    emb_ref[i, pl.ds(Wt, tail), :].astype(out_ref.dtype))

    return kernel


def prompt_learner_forward(embedding, learnable_tokens, name_lengths,
                           class_name_position, *, class_block=None):
    """Pallas-backed equivalent of PromptLearner.forward()."""
    if class_name_position not in ("front", "middle", "end"):
        raise ValueError(
            f"`class_name_position`: {class_name_position} not in supported modes "
            '["front", "middle", "end"]')

    embedding = jnp.asarray(embedding)
    learnable_tokens = jnp.asarray(learnable_tokens)
    C, T, D = embedding.shape
    n_ctx = learnable_tokens.shape[0]

    nl_host = [int(x) for x in name_lengths]
    max_nl = max(nl_host) if nl_host else 0
    if max_nl > T - 1 - n_ctx:
        raise ValueError("name length exceeds available suffix length")

    itemsize = embedding.dtype.itemsize
    Cb = class_block if class_block is not None else _pick_class_block(C, T, D, itemsize)
    Cb = max(1, min(int(Cb), C))

    # Pad C up to a multiple of Cb (avoids the Cb=1 trap for prime-ish C).
    n_blocks = -(-C // Cb)
    C_pad = n_blocks * Cb
    if C_pad != C:
        embedding = jnp.pad(embedding, ((0, C_pad - C), (0, 0), (0, 0)))
        nl_host = nl_host + [0] * (C_pad - C)
    nl = jnp.asarray(np.asarray(nl_host, dtype=np.int32))

    block_bytes = Cb * T * D * itemsize
    vmem_cap = _vmem_capacity_bytes()
    # in+out blocks, double-buffered, + slack; never above physical VMEM.
    vmem_limit = int(max(32 << 20,
                         min(4 * block_bytes + (4 << 20), vmem_cap - (8 << 20))))

    kernel = _make_kernel(class_name_position, Cb, T, D, n_ctx, max_nl)

    out = pl.pallas_call(
        kernel,
        out_shape=jax.ShapeDtypeStruct((C_pad, T, D), embedding.dtype),
        grid_spec=pltpu.PrefetchScalarGridSpec(
            num_scalar_prefetch=1,              # name_lengths -> SMEM
            grid=(C_pad // Cb,),
            in_specs=[
                pl.BlockSpec((Cb, T, D), lambda c, _nl: (c, 0, 0)),
                pl.BlockSpec((n_ctx, D), lambda c, _nl: (0, 0)),
            ],
            out_specs=pl.BlockSpec((Cb, T, D), lambda c, _nl: (c, 0, 0)),
        ),
        compiler_params=pltpu.CompilerParams(
            dimension_semantics=("parallel",),
            vmem_limit_bytes=vmem_limit,
        ),
    )(nl, embedding, learnable_tokens)

    if C_pad != C:
        out = out[:C]
    return out


def _reference_forward(embedding, learnable_tokens, name_lengths, mode):
    """Pure-numpy replication of the PyTorch forward (torch.cat semantics)."""
    emb = np.asarray(embedding)
    learn = np.asarray(learnable_tokens)
    C, T, D = emb.shape
    n_ctx = learn.shape[0]
    learn_b = np.broadcast_to(learn[None], (C, n_ctx, D))
    prefix = emb[:, :1, :]
    suffix = emb[:, 1 + n_ctx:, :]
    if mode == "end":
        return np.concatenate([prefix, learn_b, suffix], axis=1)
    prompts = []
    half = n_ctx // 2
    for i in range(C):
        nl = name_lengths[i]
        if mode == "front":
            parts = [prefix[i:i + 1, :1], suffix[i:i + 1, :nl],
                     learn_b[i:i + 1], suffix[i:i + 1, nl:]]
        elif mode == "middle":
            parts = [prefix[i:i + 1], learn_b[i:i + 1, :half],
                     suffix[i:i + 1, :nl], learn_b[i:i + 1, half:],
                     suffix[i:i + 1, nl:]]
        else:
            raise ValueError(mode)
        prompts.append(np.concatenate(parts, axis=1))
    return np.concatenate(prompts, axis=0)


if __name__ == "__main__":
    # Small synthetic configuration consistent with the module:
    #   num_classes=4, context_length=16, num_learnable_prompt_tokens=4,
    #   transformer_width=128 (lane-dense), name lengths from a fake tokenizer.
    C, T, n_ctx, D = 4, 16, 4, 128
    name_lengths = [1, 2, 3, 2]

    key = jax.random.PRNGKey(0)
    k_emb, k_learn = jax.random.split(key)
    # token_embedding(tokenized_prompts): synthetic deterministic embedding.
    embedding = jax.random.normal(k_emb, (C, T, D), dtype=jnp.float32)
    # nn.Parameter(torch.empty(n_ctx, width)) -> deterministic init here.
    learnable_tokens = jax.random.normal(k_learn, (n_ctx, D), dtype=jnp.float32)

    ok = True
    for mode in ("end", "front", "middle"):
        out = prompt_learner_forward(embedding, learnable_tokens, name_lengths, mode)
        out = jax.block_until_ready(out)
        ref = _reference_forward(embedding, learnable_tokens, name_lengths, mode)
        if not np.allclose(np.asarray(out), ref, atol=1e-5, rtol=1e-5):
            ok = False
            print(f"MISMATCH in mode={mode}")
    if ok:
        print("KERNEL_OK")
</pallas_src>

<mosaic_0001>
module attributes {stable_mosaic.version = 11 : i64} {
  func.func @kernel(%arg0: i32, %arg1: memref<4xi32, #tpu.memory_space<smem>>, %arg2: memref<4x16x128xf32, #tpu.memory_space<vmem>>, %arg3: memref<4x128xf32, #tpu.memory_space<vmem>>, %arg4: memref<4x16x128xf32, #tpu.memory_space<vmem>>) attributes {dimension_semantics = [#tpu.dimension_semantics<parallel>], iteration_bounds = array<i64: 1>, scalar_prefetch = 1 : i64, scratch_operands = 0 : i64, tpu.core_type = #tpu.core_type<tc>, window_params = [{transform_indices = @transform_0, window_bounds = array<i64: 4, 16, 128>}, {pipeline_mode = #tpu.pipeline_mode<synchronous>, transform_indices = @transform_1, window_bounds = array<i64: 4, 128>}, {transform_indices = @transform_2, window_bounds = array<i64: 4, 16, 128>}]} {
    %c0 = arith.constant 0 : index
    %c0_0 = arith.constant 0 : index
    %0 = vector.load %arg3[%c0, %c0_0] : memref<4x128xf32, #tpu.memory_space<vmem>>, vector<4x128xf32>
    %c0_i32 = arith.constant 0 : i32
    %c4_i32 = arith.constant 4 : i32
    %1 = arith.addi %c0_i32, %c4_i32 : i32
    %c1_i32 = arith.constant 1 : i32
    scf.for %arg5 = %c0_i32 to %1 step %c1_i32  : i32 {
      %c1_i32_2 = arith.constant 1 : i32
      %2 = arith.muli %arg5, %c1_i32_2 : i32
      %c0_i32_3 = arith.constant 0 : i32
      %3 = arith.addi %c0_i32_3, %2 : i32
      %4 = arith.index_cast %3 : i32 to index
      %c0_4 = arith.constant 0 : index
      %c0_5 = arith.constant 0 : index
      %5 = vector.load %arg2[%4, %c0_4, %c0_5] : memref<4x16x128xf32, #tpu.memory_space<vmem>>, vector<1x1x128xf32>
      %6 = vector.shape_cast %5 : vector<1x1x128xf32> to vector<1x128xf32>
      %7 = tpu.concatenate %6, %0 in 0 : vector<1x128xf32>, vector<4x128xf32> -> vector<5x128xf32>
      %8 = arith.index_cast %3 : i32 to index
      %c0_6 = arith.constant 0 : index
      %c0_7 = arith.constant 0 : index
      %9 = vector.load %arg4[%8, %c0_6, %c0_7] : memref<4x16x128xf32, #tpu.memory_space<vmem>>, vector<1x5x128xf32>
      %10 = vector.shape_cast %9 : vector<1x5x128xf32> to vector<5x128xf32>
      %11 = vector.shape_cast %7 : vector<5x128xf32> to vector<1x5x128xf32>
      tpu.vector_store %arg4[%8, %c0_6, %c0_7], %11 {strides = array<i32>} : memref<4x16x128xf32, #tpu.memory_space<vmem>>, vector<1x5x128xf32>,
      %12 = arith.index_cast %3 : i32 to index
      %c5 = arith.constant 5 : index
      %c0_8 = arith.constant 0 : index
      %13 = vector.load %arg2[%12, %c5, %c0_8] : memref<4x16x128xf32, #tpu.memory_space<vmem>>, vector<1x11x128xf32>
      %14 = vector.shape_cast %13 : vector<1x11x128xf32> to vector<11x128xf32>
      %15 = arith.index_cast %3 : i32 to index
      %c5_9 = arith.constant 5 : index
      %c0_10 = arith.constant 0 : index
      %16 = vector.load %arg4[%15, %c5_9, %c0_10] : memref<4x16x128xf32, #tpu.memory_space<vmem>>, vector<1x11x128xf32>
      %17 = vector.shape_cast %16 : vector<1x11x128xf32> to vector<11x128xf32>
      %18 = vector.shape_cast %14 : vector<11x128xf32> to vector<1x11x128xf32>
      tpu.vector_store %arg4[%15, %c5_9, %c0_10], %18 {strides = array<i32>} : memref<4x16x128xf32, #tpu.memory_space<vmem>>, vector<1x11x128xf32>,
    }
    %c4_i32_1 = arith.constant 4 : i32
    return
  }
  func.func @transform_0(%arg0: i32, %arg1: memref<4xi32, #tpu.memory_space<smem>>) -> (i32, i32, i32) {
    %c0_i32 = arith.constant 0 : i32
    %c0_i32_0 = arith.constant 0 : i32
    %c0_i32_1 = arith.constant 0 : i32
    return %arg0, %c0_i32, %c0_i32_0 : i32, i32, i32
  }
  func.func @transform_1(%arg0: i32, %arg1: memref<4xi32, #tpu.memory_space<smem>>) -> (i32, i32) {
    %c0_i32 = arith.constant 0 : i32
    %c0_i32_0 = arith.constant 0 : i32
    %c0_i32_1 = arith.constant 0 : i32
    return %c0_i32, %c0_i32_0 : i32, i32
  }
  func.func @transform_2(%arg0: i32, %arg1: memref<4xi32, #tpu.memory_space<smem>>) -> (i32, i32, i32) {
    %c0_i32 = arith.constant 0 : i32
    %c0_i32_0 = arith.constant 0 : i32
    %c0_i32_1 = arith.constant 0 : i32
    return %arg0, %c0_i32, %c0_i32_0 : i32, i32, i32
  }
}

</mosaic_0001>

<bundles_post_ra>
// kernel: tpu_custom_call.1
= control target key start
LH: loop header
LB: loop body
LE: loop exit
PB: predicated region body
PF: predicated region fallthrough
CT: control target
= control target key end

     0   :  { %s230_s0 = inlined_call_operand.hbm [shape: s32[4], index: 0, kind: input, shape index: {}]   ;;  %s231_s1 = inlined_call_operand.hbm [shape: f32[4,16,128], index: 1, kind: input, shape index: {}]   ;;  %s232_s2 = inlined_call_operand.vmem [shape: f32[4,128], index: 2, kind: input, shape index: {}]   ;;  %s233_s3 = inlined_call_operand.hbm [shape: f32[4,16,128], index: 3, kind: output, shape index: {}]  }
   0x1   :  { %s92_s14 = scalar_lea.hbm %s230_s0, 16 }
   0x2   :  { %p93_p0 = scmp.ne.s32.totalorder %s230_s0, %s92_s14  ;;  %p96_p1 = scmp.lt.u32.totalorder %s92_s14, %s230_s0 }
   0x4   :  { %p98_p2 = pnand %p96_p1, %p93_p0 }
   0x6   :  { %101 = shalt.err (!%p98_p2)  }
   0x7   :  { %s160_s19 = smov [#allocation3]  }
   0x8   :  { %9 = dma.hbm_to_smem %s230_s0, 16, %s160_s19, [#allocation2] }
   0x9   :  { %150 = dma.done.wait [#allocation2], 16 }
   0xa   :  { %151 = vsyncadd [#allocation2], 4294967280 }
   0xb   :  { %11 = sfence }
   0xc   :  { %12 = vsyncpa [#allocation5], 0 }
   0xd   :  { %13 = vsyncpa [#allocation6], 0  ;;  %s161_s22 = smov [#allocation4]   ;;  %s102_s26 = scalar_lea.hbm %s231_s1, 1024 }
   0xe   :  { %s19_s23 = sshll.u32 %s161_s22, 4  ;;  %p103_p3 = scmp.ne.s32.totalorder %s231_s1, %s102_s26  ;;  %s20_s23 = int_to_ptr.vmem [resolvable:$true] %s19_s23 }
   0xf   :  { %p106_p4 = scmp.lt.u32.totalorder %s102_s26, %s231_s1 }
  0x11   :  { %p108_p5 = pnand %p106_p4, %p103_p3 }
  0x13   :  { %111 = shalt.err (!%p108_p5)
}
  0x14   :  { %s112_s0 = scalar_lea.vmem %s20_s23, 1024  ;;  %p117_p7 = scmp.lt.s32.totalorder %s20_s23, %s20_s23 }
  0x15   :  { %p113_p6 = scmp.ne.s32.totalorder %s20_s23, %s112_s0  ;;  %p118_p8 = scmp.lt.s32.totalorder %s112_s0, %s112_s0 }
  0x17   :  { %p119_p9 = por %p118_p8, %p117_p7 }
  0x19   :  { %p120_p10 = pnand %p119_p9, %p113_p6 }
  0x1b   :  { %123 = shalt.err (!%p120_p10)
}
  0x1c   :  { %s162_s4 = smov 128   ;;  %s163_s5 = smov 8  }
  0x1d   :  { %25 = dma.hbm_to_vmem [thread:$0]  %s231_s1, 1024, %s20_s23, [#allocation5], %s162_s4, %s162_s4, %s163_s5  }
  0x1e   :  { %152 = dma.done.wait [#allocation5], 1024  }
  0x1f   :  { %153 = vsyncadd [#allocation5], 4294966272  ;;  %v31_v0 = vld [vmem:[%s232_s2] sm:$0xf]  ;;  %s156_s10 = smov 0  }
  0x20 LB: > { %v42_v1 = vrot.slane %v31_v0, 7  ;;  %s78_s11 = sshll.u32 %s158_s10, 4  ;;  %vm44_vm0 = vcmask 1040384   ;;  %s37_s10 = sadd.s32 1, %s158_s10   ;;  %s158_s10 = sphi %s156_s10, %s37_s10  }
  0x21   : > { %s39_s12 = scalar_lea.vmem [#allocation4], %s78_s11  ;;  %s46_s13 = scalar_lea.vmem [#allocation7], %s78_s11 }
  0x22   : > { %v40_v2 = vld [vmem:[%s39_s12] sm:$0x1]  ;;  %v48_v3 = vld [vmem:[%s39_s12 + $0x5] sm:$0xff]  ;;  %v49_v4 = vld [vmem:[%s39_s12 + $0xd] sm:$0x7]  ;;  %p34_p11 = scmp.ge.s32.totalorder %s37_s10, 4  }
  0x23   : > { %v45_v5 = vsel %vm44_vm0, %v40_v2, %v42_v1  ;;  %50 = vst [vmem:[%s46_s13 + $0x5] sm:$0xff] %v48_v3  ;;  %51 = vst [vmem:[%s46_s13 + $0xd] sm:$0x7] %v49_v4  ;;  %s164_s1 = smov (%p34_p11), [#allocation7]  }
  0x24   : > { %47 = vst [vmem:[%s46_s13] sm:$0x1f] %v45_v5  ;;  %36 = sbr.rel (!%p34_p11) target bundleno = 32 (0x20), region = 41  ;;  %s57_s2 = sshll.u32 (%p34_p11), %s164_s1, 4  ;;  %s58_s2 = int_to_ptr.vmem [resolvable:$true] %s57_s2 }
  0x25   :  { %s124_s14 = scalar_lea.vmem (%p34_p11), %s58_s2, 1024  ;;  %p129_p13 = scmp.lt.s32.totalorder (%p34_p11), %s58_s2, %s58_s2 }
  0x26   :  { %p125_p12 = scmp.ne.s32.totalorder (%p34_p11), %s58_s2, %s124_s14  ;;  %p130_p0 = scmp.lt.s32.totalorder (%p34_p11), %s124_s14, %s124_s14 }
  0x28   :  { %p131_p1 = por (%p34_p11), %p130_p0, %p129_p13 }
  0x2a   :  { %p132_p2 = pnand (%p34_p11), %p131_p1, %p125_p12 }
  0x2c   :  { %135 = shalt.err (!%p132_p2)
}
  0x2d   :  { %s136_s17 = scalar_lea.hbm %s233_s3, 1024 }
  0x2e   :  { %p137_p3 = scmp.ne.s32.totalorder %s233_s3, %s136_s17  ;;  %p140_p4 = scmp.lt.u32.totalorder %s136_s17, %s233_s3 }
  0x30   :  { %p142_p5 = pnand %p140_p4, %p137_p3 }
  0x32   :  { %145 = shalt.err (!%p142_p5)
}
  0x33   :  { %63 = dma.vmem_to_hbm [thread:$0]  %s58_s2, 1024, %s233_s3, [#allocation6], %s162_s4, %s162_s4, %s163_s5  }
  0x34   :  { %154 = dma.done.wait [#allocation6], 1024  }
  0x35   :  { %155 = vsyncadd [#allocation6], 4294966272 }
  0x36   :  { %67 = vsyncpa [#allocation5], 1 }
  0x37   :  { %68 = vsyncpa [#allocation6], 1 }

</bundles_post_ra>
